<compile_context>
chip_gen: v7x
topology: tpu7x:2x2x1
jax: 0.10.0
libtpu: 0.0.40
codegen_flags: <defaults>
</compile_context>

<pallas_src>
import numpy as np

import jax
import jax.numpy as jnp
from jax.experimental import pallas as pl
from jax.experimental.pallas import tpu as pltpu


# ----------------------------------------------------------------------------
# Static conv1 im2col index (host-side numpy, computed once).
# 16x16 image, pad 2 (value -1), 5x5 kernel, stride 2 -> 8x8 output.
# Column 256 of the extended image row holds -1, column 257 holds 0 (used for
# the zero-padded taps 25..31).
# ----------------------------------------------------------------------------
def _build_p1_index():
    idx = np.full((64, 32), 257, np.int32)          # default -> zero column
    for oh in range(8):
        for ow in range(8):
            for kh in range(5):
                for kw in range(5):
                    ih = 2 * oh + kh - 2
                    iw = 2 * ow + kw - 2
                    inside = (0 <= ih < 16) and (0 <= iw < 16)
                    idx[oh * 8 + ow, kh * 5 + kw] = ih * 16 + iw if inside else 256
    return jnp.asarray(idx.reshape(-1))


_P1_IDX = _build_p1_index()


# ----------------------------------------------------------------------------
# One-time, batch-independent parameter packing (outside the jitted forward).
# ----------------------------------------------------------------------------
def pack_params(params):
    H1w, H1b, H2w, H2b, H3w, H3b, fcw, fcb = (np.asarray(p, np.float32)
                                              for p in params)

    # conv1: [32(k pad), 16(o pad)];  w1[k, o] = H1w[o, 0, kh, kw]
    w1 = np.zeros((32, 16), np.float32)
    w1[:25, :12] = H1w.reshape(12, 25).T
    # per-position conv1 bias: [8(h), 8(w), 16(c)]
    b1 = np.zeros((8, 8, 16), np.float32)
    b1[:, :, :12] = np.transpose(H1b, (1, 2, 0))

    # dense zero-filled 12x12 conv2 weight reproducing the channel groups
    W2d = np.zeros((12, 12, 5, 5), np.float32)
    W2d[0:4, 0:8] = H2w[0:4]            # group 1: in channels 0:8
    W2d[4:8, 4:12] = H2w[4:8]           # group 2: in channels 4:12
    W2d[8:12, 0:4] = H2w[8:12, 0:4]     # group 3: in channels 0:4
    W2d[8:12, 8:12] = H2w[8:12, 4:8]    # group 3: in channels 8:12

    # conv2 as ONE matmul: K = (iw, kh, c) = 8*5*16 = 640, N = (ow, o) = 64.
    # The stride-2 width taps are folded in via kw = iw - 2*ow + 2.
    w2 = np.zeros((640, 64), np.float32)
    for iw in range(8):
        for kh in range(5):
            for ow in range(4):
                kw = iw - 2 * ow + 2
                if 0 <= kw < 5:
                    w2[iw * 80 + kh * 16: iw * 80 + kh * 16 + 12,
                       ow * 16: ow * 16 + 12] = W2d[:, :, kh, kw].T  # [c, o]

    # conv2 bias with the constant -1 spatial-pad taps folded in: [4(oh), 64]
    b2 = np.zeros((4, 64), np.float32)
    for oh in range(4):
        for ow in range(4):
            pad = np.zeros(12, np.float32)
            for kh in range(5):
                for kw in range(5):
                    ih = 2 * oh + kh - 2
                    iw = 2 * ow + kw - 2
                    if not (0 <= ih < 8 and 0 <= iw < 8):
                        pad += W2d[:, :, kh, kw].sum(axis=1)   # per output o
            b2[oh, ow * 16: ow * 16 + 12] = H2b[:, oh, ow] - pad

    # H3: our h2 lane order is (s = oh*4+ow, o); torch flatten is j = o*16 + s.
    w3 = np.zeros((16, 16, 32), np.float32)
    w3[:, :12, :30] = np.transpose(H3w.reshape(30, 12, 16), (2, 1, 0))  # [s,o,u]
    w3 = w3.reshape(256, 32)
    b3 = np.zeros((1, 32), np.float32)
    b3[0, :30] = H3b

    # FC: [32, 16]
    w4 = np.zeros((32, 16), np.float32)
    w4[:30, :10] = fcw.T
    b4 = np.zeros((1, 16), np.float32)
    b4[0, :10] = fcb

    return tuple(jnp.asarray(a) for a in (w1, b1, w2, b2, w3, b3, w4, b4))


# ----------------------------------------------------------------------------
# The fused Pallas kernel (one batch tile per invocation).
# ----------------------------------------------------------------------------
def _lenet1_kernel(p1_ref, w1_ref, b1_ref, w2_ref, b2_ref, w3_ref, b3_ref,
                   w4_ref, b4_ref, out_ref):
    bt = out_ref.shape[0]
    f32 = jnp.float32

    # ---- H1: conv(1->12, 5x5, stride 2) as one [bt*64, 32] @ [32, 16] matmul -
    acc1 = jnp.dot(p1_ref[...], w1_ref[...], preferred_element_type=f32)
    h1 = jnp.tanh(acc1.reshape(bt, 8, 8, 16) + b1_ref[...])   # [bt, 8h, 8w, 16c]

    # ---- conv2 patch assembly (replaces the old one-hot gather matmul) -------
    # Height taps: even/odd split along the leading h axis; out-of-range rows
    # are zero because their -1-pad contribution is folded into b2.
    h1r = h1.reshape(bt, 4, 2, 8, 16)
    h_even = h1r[:, :, 0]                       # heights 0,2,4,6  [bt, 4, 8, 16]
    h_odd = h1r[:, :, 1]                        # heights 1,3,5,7
    zrow = jnp.zeros((bt, 1, 8, 16), f32)
    taps = [
        jnp.concatenate([zrow, h_even[:, 0:3]], axis=1),   # kh=0: ih = 2*oh - 2
        jnp.concatenate([zrow, h_odd[:, 0:3]], axis=1),    # kh=1: ih = 2*oh - 1
        h_even,                                            # kh=2: ih = 2*oh
        h_odd,                                             # kh=3: ih = 2*oh + 1
        jnp.concatenate([h_even[:, 1:4], zrow], axis=1),   # kh=4: ih = 2*oh + 2
    ]
    kk = jnp.concatenate(taps, axis=-1)         # [bt, 4oh, 8w, 80 (kh, c)]
    # Width taps / stride-2 / groups live in w2; move w into the K (lane) dim.
    a2 = jnp.concatenate([kk[:, :, iw, :] for iw in range(8)], axis=-1)
    a2 = a2.reshape(bt * 4, 640)                # rows (b, oh), K = (iw, kh, c)

    # ---- H2: single [bt*4, 640] @ [640, 64] matmul + bias + tanh -------------
    acc2 = jnp.dot(a2, w2_ref[...], preferred_element_type=f32)   # [bt*4, 64]
    h2 = jnp.tanh(acc2.reshape(bt, 4, 64) + b2_ref[...])          # [bt, 4oh, 64]
    h2 = jnp.concatenate([h2[:, oh, :] for oh in range(4)], axis=-1)  # [bt, 256]

    # ---- H3 (192->30) + FC (30->10), all in vregs, no scratch ----------------
    h3 = jnp.tanh(jnp.dot(h2, w3_ref[...], preferred_element_type=f32)
                  + b3_ref[...])                                   # [bt, 32]
    logits = jnp.dot(h3, w4_ref[...], preferred_element_type=f32) + b4_ref[...]
    out_ref[...] = jax.nn.sigmoid(logits)                          # [bt, 16]


def _lenet1_call(p1, weights, batch):
    out_shape = jax.ShapeDtypeStruct((batch, 16), jnp.float32)
    bt = 8
    if batch <= bt or batch % bt != 0:
        # Single invocation, no grid: no pipeline prologue/epilogue overhead.
        return pl.pallas_call(_lenet1_kernel, out_shape=out_shape)(p1, *weights)

    # Larger batches: tile the batch across the grid; "parallel" lets v7x
    # shard tiles across its two TensorCores (harmless on v5e/v6e).
    def full(shape):
        return pl.BlockSpec(shape, lambda i, _n=len(shape): (0,) * _n)

    return pl.pallas_call(
        _lenet1_kernel,
        out_shape=out_shape,
        grid=(batch // bt,),
        in_specs=[pl.BlockSpec((bt * 64, 32), lambda i: (i, 0))]
                 + [full(w.shape) for w in weights],
        out_specs=pl.BlockSpec((bt, 16), lambda i: (i, 0)),
        compiler_params=pltpu.CompilerParams(
            dimension_semantics=("parallel",)),
    )(p1, *weights)


# ----------------------------------------------------------------------------
# Jitted forward: one static gather for conv1 im2col + one fused kernel.
# ----------------------------------------------------------------------------
@jax.jit
def lenet1_forward(x, packed):
    batch = x.shape[0]
    xe = jnp.concatenate(
        [x.reshape(batch, 256).astype(jnp.float32),
         jnp.full((batch, 1), -1.0, jnp.float32),      # -1 spatial pad value
         jnp.zeros((batch, 1), jnp.float32)], axis=1)  # 0 for padded K taps
    p1 = jnp.take(xe, _P1_IDX, axis=1).reshape(batch * 64, 32)   # conv1 im2col
    out16 = _lenet1_call(p1, packed, batch)
    return out16[:, :10]


# ----------------------------------------------------------------------------
# Pure-JAX reference (mirrors the PyTorch forward) for a correctness check.
# ----------------------------------------------------------------------------
def _pad_m1(x, p=2):
    return jnp.pad(x, ((0, 0), (0, 0), (p, p), (p, p)), constant_values=-1.0)


def reference_forward(x, params):
    H1w, H1b, H2w, H2b, H3w, H3b, fcw, fcb = params
    conv = lambda a, w: jax.lax.conv_general_dilated(
        a, w, (2, 2), "VALID", dimension_numbers=("NCHW", "OIHW", "NCHW"))
    xp = _pad_m1(x)
    h1 = jnp.tanh(conv(xp, H1w) + H1b[None])
    h1p = _pad_m1(h1)
    o1 = conv(h1p[:, 0:8], H2w[0:4]) + H2b[0:4][None]
    o2 = conv(h1p[:, 4:12], H2w[4:8]) + H2b[4:8][None]
    o3 = conv(jnp.concatenate([h1p[:, 0:4], h1p[:, 8:12]], axis=1),
              H2w[8:12]) + H2b[8:12][None]
    h2 = jnp.tanh(jnp.concatenate([o1, o2, o3], axis=1))
    flat = h2.reshape(x.shape[0], -1)
    h3 = jnp.tanh(flat @ H3w.T + H3b)
    return jax.nn.sigmoid(h3 @ fcw.T + fcb)


# ----------------------------------------------------------------------------
def init_params(key):
    k1, k2, k3, k4 = jax.random.split(key, 4)

    def winit(k, f_in, shape):
        lim = 2.4 / f_in
        return jax.random.uniform(k, shape, jnp.float32, -lim, lim)

    H1w = winit(k1, 1 * 5 * 5, (12, 1, 5, 5))
    H1b = jnp.zeros((12, 8, 8), jnp.float32)
    H2w = winit(k2, 8 * 5 * 5, (12, 8, 5, 5))
    H2b = jnp.zeros((12, 4, 4), jnp.float32)
    H3w = winit(k3, 192, (30, 192))
    H3b = jnp.zeros((30,), jnp.float32)
    fcw = winit(k4, 30, (10, 30))
    fcb = jnp.zeros((10,), jnp.float32)
    return (H1w, H1b, H2w, H2b, H3w, H3b, fcw, fcb)


if __name__ == "__main__":
    key = jax.random.PRNGKey(0)
    kp, kx = jax.random.split(key)
    params = init_params(kp)
    packed = pack_params(params)        # one-time, batch-independent packing

    # LeNet-1 expects 16x16 single-channel images; batch=2 (no-grid path).
    x = jax.random.normal(kx, (2, 1, 16, 16), dtype=jnp.float32)
    out = jax.block_until_ready(lenet1_forward(x, packed))
    ref = jax.block_until_ready(reference_forward(x, params))
    assert out.shape == (2, 10), out.shape
    assert jnp.allclose(out, ref, atol=2e-4, rtol=2e-4), (
        "Pallas output does not match reference; max abs diff = "
        f"{float(jnp.max(jnp.abs(out - ref)))}")

    # Larger batch with the same packed params exercises the batch-tiled
    # ("parallel") grid path.
    xb = jax.random.normal(jax.random.PRNGKey(1), (16, 1, 16, 16),
                           dtype=jnp.float32)
    outb = jax.block_until_ready(lenet1_forward(xb, packed))
    refb = jax.block_until_ready(reference_forward(xb, params))
    assert outb.shape == (16, 10), outb.shape
    assert jnp.allclose(outb, refb, atol=2e-4, rtol=2e-4), (
        "Pallas (gridded) output does not match reference; max abs diff = "
        f"{float(jnp.max(jnp.abs(outb - refb)))}")

    print("KERNEL_OK")
</pallas_src>

<mosaic_0001>
module attributes {stable_mosaic.version = 11 : i64} {
  func.func @_lenet1_kernel(%arg0: memref<128x32xf32, #tpu.memory_space<vmem>>, %arg1: memref<32x16xf32, #tpu.memory_space<vmem>>, %arg2: memref<8x8x16xf32, #tpu.memory_space<vmem>>, %arg3: memref<640x64xf32, #tpu.memory_space<vmem>>, %arg4: memref<4x64xf32, #tpu.memory_space<vmem>>, %arg5: memref<256x32xf32, #tpu.memory_space<vmem>>, %arg6: memref<1x32xf32, #tpu.memory_space<vmem>>, %arg7: memref<32x16xf32, #tpu.memory_space<vmem>>, %arg8: memref<1x16xf32, #tpu.memory_space<vmem>>, %arg9: memref<2x16xf32, #tpu.memory_space<vmem>>) attributes {dimension_semantics = [], scalar_prefetch = 0 : i64, scratch_operands = 0 : i64, tpu.core_type = #tpu.core_type<tc>} {
    %c0 = arith.constant 0 : index
    %c0_0 = arith.constant 0 : index
    %0 = vector.load %arg0[%c0, %c0_0] : memref<128x32xf32, #tpu.memory_space<vmem>>, vector<128x32xf32>
    %c0_1 = arith.constant 0 : index
    %c0_2 = arith.constant 0 : index
    %1 = vector.load %arg1[%c0_1, %c0_2] : memref<32x16xf32, #tpu.memory_space<vmem>>, vector<32x16xf32>
    %cst = arith.constant dense<0.000000e+00> : vector<128x16xf32>
    %2 = tpu.matmul %0, %1, %cst {dimension_numbers = #tpu.dot_dimension_numbers<[1], [0], [0], [1], [0, 0, 1, 1], [], []>} : vector<128x32xf32>, vector<32x16xf32>, vector<128x16xf32> -> vector<128x16xf32>
    %3 = vector.shape_cast %2 : vector<128x16xf32> to vector<2x8x8x16xf32>
    %c0_3 = arith.constant 0 : index
    %c0_4 = arith.constant 0 : index
    %c0_5 = arith.constant 0 : index
    %4 = vector.load %arg2[%c0_3, %c0_4, %c0_5] : memref<8x8x16xf32, #tpu.memory_space<vmem>>, vector<8x8x16xf32>
    %5 = vector.shape_cast %4 : vector<8x8x16xf32> to vector<1x8x8x16xf32>
    %6 = vector.broadcast %5 : vector<1x8x8x16xf32> to vector<2x8x8x16xf32>
    %7 = arith.addf %3, %6 : vector<2x8x8x16xf32>
    %8 = math.tanh %7 : vector<2x8x8x16xf32>
    %9 = vector.shape_cast %8 : vector<2x8x8x16xf32> to vector<2x4x2x8x16xf32>
    %10 = vector.extract_strided_slice %9 {offsets = [0, 0, 0, 0, 0], sizes = [2, 4, 1, 8, 16], strides = [1, 1, 1, 1, 1]} : vector<2x4x2x8x16xf32> to vector<2x4x1x8x16xf32>
    %11 = vector.shape_cast %10 : vector<2x4x1x8x16xf32> to vector<2x4x8x16xf32>
    %12 = vector.extract_strided_slice %9 {offsets = [0, 0, 1, 0, 0], sizes = [2, 4, 1, 8, 16], strides = [1, 1, 1, 1, 1]} : vector<2x4x2x8x16xf32> to vector<2x4x1x8x16xf32>
    %13 = vector.shape_cast %12 : vector<2x4x1x8x16xf32> to vector<2x4x8x16xf32>
    %cst_6 = arith.constant 0.000000e+00 : f32
    %14 = vector.broadcast %cst_6 : f32 to vector<2x1x8x16xf32>
    %15 = vector.extract_strided_slice %11 {offsets = [0, 0, 0, 0], sizes = [2, 3, 8, 16], strides = [1, 1, 1, 1]} : vector<2x4x8x16xf32> to vector<2x3x8x16xf32>
    %16 = tpu.concatenate %14, %15 in 1 : vector<2x1x8x16xf32>, vector<2x3x8x16xf32> -> vector<2x4x8x16xf32>
    %17 = vector.extract_strided_slice %13 {offsets = [0, 0, 0, 0], sizes = [2, 3, 8, 16], strides = [1, 1, 1, 1]} : vector<2x4x8x16xf32> to vector<2x3x8x16xf32>
    %18 = tpu.concatenate %14, %17 in 1 : vector<2x1x8x16xf32>, vector<2x3x8x16xf32> -> vector<2x4x8x16xf32>
    %19 = vector.extract_strided_slice %11 {offsets = [0, 1, 0, 0], sizes = [2, 3, 8, 16], strides = [1, 1, 1, 1]} : vector<2x4x8x16xf32> to vector<2x3x8x16xf32>
    %20 = tpu.concatenate %19, %14 in 1 : vector<2x3x8x16xf32>, vector<2x1x8x16xf32> -> vector<2x4x8x16xf32>
    %21 = tpu.concatenate %16, %18, %11, %13, %20 in 3 : vector<2x4x8x16xf32>, vector<2x4x8x16xf32>, vector<2x4x8x16xf32>, vector<2x4x8x16xf32>, vector<2x4x8x16xf32> -> vector<2x4x8x80xf32>
    %22 = vector.extract_strided_slice %21 {offsets = [0, 0, 0, 0], sizes = [2, 4, 1, 80], strides = [1, 1, 1, 1]} : vector<2x4x8x80xf32> to vector<2x4x1x80xf32>
    %23 = vector.shape_cast %22 : vector<2x4x1x80xf32> to vector<2x4x80xf32>
    %24 = vector.extract_strided_slice %21 {offsets = [0, 0, 1, 0], sizes = [2, 4, 1, 80], strides = [1, 1, 1, 1]} : vector<2x4x8x80xf32> to vector<2x4x1x80xf32>
    %25 = vector.shape_cast %24 : vector<2x4x1x80xf32> to vector<2x4x80xf32>
    %26 = vector.extract_strided_slice %21 {offsets = [0, 0, 2, 0], sizes = [2, 4, 1, 80], strides = [1, 1, 1, 1]} : vector<2x4x8x80xf32> to vector<2x4x1x80xf32>
    %27 = vector.shape_cast %26 : vector<2x4x1x80xf32> to vector<2x4x80xf32>
    %28 = vector.extract_strided_slice %21 {offsets = [0, 0, 3, 0], sizes = [2, 4, 1, 80], strides = [1, 1, 1, 1]} : vector<2x4x8x80xf32> to vector<2x4x1x80xf32>
    %29 = vector.shape_cast %28 : vector<2x4x1x80xf32> to vector<2x4x80xf32>
    %30 = vector.extract_strided_slice %21 {offsets = [0, 0, 4, 0], sizes = [2, 4, 1, 80], strides = [1, 1, 1, 1]} : vector<2x4x8x80xf32> to vector<2x4x1x80xf32>
    %31 = vector.shape_cast %30 : vector<2x4x1x80xf32> to vector<2x4x80xf32>
    %32 = vector.extract_strided_slice %21 {offsets = [0, 0, 5, 0], sizes = [2, 4, 1, 80], strides = [1, 1, 1, 1]} : vector<2x4x8x80xf32> to vector<2x4x1x80xf32>
    %33 = vector.shape_cast %32 : vector<2x4x1x80xf32> to vector<2x4x80xf32>
    %34 = vector.extract_strided_slice %21 {offsets = [0, 0, 6, 0], sizes = [2, 4, 1, 80], strides = [1, 1, 1, 1]} : vector<2x4x8x80xf32> to vector<2x4x1x80xf32>
    %35 = vector.shape_cast %34 : vector<2x4x1x80xf32> to vector<2x4x80xf32>
    %36 = vector.extract_strided_slice %21 {offsets = [0, 0, 7, 0], sizes = [2, 4, 1, 80], strides = [1, 1, 1, 1]} : vector<2x4x8x80xf32> to vector<2x4x1x80xf32>
    %37 = vector.shape_cast %36 : vector<2x4x1x80xf32> to vector<2x4x80xf32>
    %38 = tpu.concatenate %23, %25, %27, %29, %31, %33, %35, %37 in 2 : vector<2x4x80xf32>, vector<2x4x80xf32>, vector<2x4x80xf32>, vector<2x4x80xf32>, vector<2x4x80xf32>, vector<2x4x80xf32>, vector<2x4x80xf32>, vector<2x4x80xf32> -> vector<2x4x640xf32>
    %39 = vector.shape_cast %38 : vector<2x4x640xf32> to vector<8x640xf32>
    %c0_7 = arith.constant 0 : index
    %c0_8 = arith.constant 0 : index
    %40 = vector.load %arg3[%c0_7, %c0_8] : memref<640x64xf32, #tpu.memory_space<vmem>>, vector<640x64xf32>
    %cst_9 = arith.constant dense<0.000000e+00> : vector<8x64xf32>
    %41 = tpu.matmul %39, %40, %cst_9 {dimension_numbers = #tpu.dot_dimension_numbers<[1], [0], [0], [1], [0, 0, 1, 1], [], []>} : vector<8x640xf32>, vector<640x64xf32>, vector<8x64xf32> -> vector<8x64xf32>
    %42 = vector.shape_cast %41 : vector<8x64xf32> to vector<2x4x64xf32>
    %c0_10 = arith.constant 0 : index
    %c0_11 = arith.constant 0 : index
    %43 = vector.load %arg4[%c0_10, %c0_11] : memref<4x64xf32, #tpu.memory_space<vmem>>, vector<4x64xf32>
    %44 = vector.shape_cast %43 : vector<4x64xf32> to vector<1x4x64xf32>
    %45 = vector.broadcast %44 : vector<1x4x64xf32> to vector<2x4x64xf32>
    %46 = arith.addf %42, %45 : vector<2x4x64xf32>
    %47 = math.tanh %46 : vector<2x4x64xf32>
    %48 = vector.extract_strided_slice %47 {offsets = [0, 0, 0], sizes = [2, 1, 64], strides = [1, 1, 1]} : vector<2x4x64xf32> to vector<2x1x64xf32>
    %49 = vector.shape_cast %48 : vector<2x1x64xf32> to vector<2x64xf32>
    %50 = vector.extract_strided_slice %47 {offsets = [0, 1, 0], sizes = [2, 1, 64], strides = [1, 1, 1]} : vector<2x4x64xf32> to vector<2x1x64xf32>
    %51 = vector.shape_cast %50 : vector<2x1x64xf32> to vector<2x64xf32>
    %52 = vector.extract_strided_slice %47 {offsets = [0, 2, 0], sizes = [2, 1, 64], strides = [1, 1, 1]} : vector<2x4x64xf32> to vector<2x1x64xf32>
    %53 = vector.shape_cast %52 : vector<2x1x64xf32> to vector<2x64xf32>
    %54 = vector.extract_strided_slice %47 {offsets = [0, 3, 0], sizes = [2, 1, 64], strides = [1, 1, 1]} : vector<2x4x64xf32> to vector<2x1x64xf32>
    %55 = vector.shape_cast %54 : vector<2x1x64xf32> to vector<2x64xf32>
    %56 = tpu.concatenate %49, %51, %53, %55 in 1 : vector<2x64xf32>, vector<2x64xf32>, vector<2x64xf32>, vector<2x64xf32> -> vector<2x256xf32>
    %c0_12 = arith.constant 0 : index
    %c0_13 = arith.constant 0 : index
    %57 = vector.load %arg5[%c0_12, %c0_13] : memref<256x32xf32, #tpu.memory_space<vmem>>, vector<256x32xf32>
    %cst_14 = arith.constant dense<0.000000e+00> : vector<2x32xf32>
    %58 = tpu.matmul %56, %57, %cst_14 {dimension_numbers = #tpu.dot_dimension_numbers<[1], [0], [0], [1], [0, 0, 1, 1], [], []>} : vector<2x256xf32>, vector<256x32xf32>, vector<2x32xf32> -> vector<2x32xf32>
    %c0_15 = arith.constant 0 : index
    %c0_16 = arith.constant 0 : index
    %59 = vector.load %arg6[%c0_15, %c0_16] : memref<1x32xf32, #tpu.memory_space<vmem>>, vector<1x32xf32>
    %60 = vector.broadcast %59 : vector<1x32xf32> to vector<2x32xf32>
    %61 = arith.addf %58, %60 : vector<2x32xf32>
    %62 = math.tanh %61 : vector<2x32xf32>
    %c0_17 = arith.constant 0 : index
    %c0_18 = arith.constant 0 : index
    %63 = vector.load %arg7[%c0_17, %c0_18] : memref<32x16xf32, #tpu.memory_space<vmem>>, vector<32x16xf32>
    %cst_19 = arith.constant dense<0.000000e+00> : vector<2x16xf32>
    %64 = tpu.matmul %62, %63, %cst_19 {dimension_numbers = #tpu.dot_dimension_numbers<[1], [0], [0], [1], [0, 0, 1, 1], [], []>} : vector<2x32xf32>, vector<32x16xf32>, vector<2x16xf32> -> vector<2x16xf32>
    %c0_20 = arith.constant 0 : index
    %c0_21 = arith.constant 0 : index
    %65 = vector.load %arg8[%c0_20, %c0_21] : memref<1x16xf32, #tpu.memory_space<vmem>>, vector<1x16xf32>
    %66 = vector.broadcast %65 : vector<1x16xf32> to vector<2x16xf32>
    %67 = arith.addf %64, %66 : vector<2x16xf32>
    %68 = arith.negf %67 : vector<2x16xf32>
    %69 = math.exp %68 : vector<2x16xf32>
    %cst_22 = arith.constant 1.000000e+00 : f32
    %70 = vector.broadcast %cst_22 : f32 to vector<2x16xf32>
    %71 = arith.addf %70, %69 : vector<2x16xf32>
    %72 = arith.divf %70, %71 : vector<2x16xf32>
    %c0_23 = arith.constant 0 : index
    %c0_24 = arith.constant 0 : index
    %73 = vector.load %arg9[%c0_23, %c0_24] : memref<2x16xf32, #tpu.memory_space<vmem>>, vector<2x16xf32>
    tpu.vector_store %arg9[%c0_23, %c0_24], %72 {strides = array<i32>} : memref<2x16xf32, #tpu.memory_space<vmem>>, vector<2x16xf32>,
    return
  }
}

</mosaic_0001>

<bundles_post_ra>
// kernel: lenet1_forward.1
= control target key start
LH: loop header
LB: loop body
LE: loop exit
PB: predicated region body
PF: predicated region fallthrough
CT: control target
= control target key end

     0   :  { %vm53_vm0 = vcmask 261120   ;;  %s2478_s0 = inlined_call_operand.vmem [shape: f32[128,32], index: 0, kind: input, shape index: {}]   ;;  %s2479_s1 = inlined_call_operand.vmem [shape: f32[32,16], index: 1, kind: input, shape index: {}]   ;;  %s2480_s2 = inlined_call_operand.vmem [shape: f32[8,8,16], index: 2, kind: input, shape index: {}]   ;;  %s2481_s3 = inlined_call_operand.vmem [shape: f32[640,64], index: 3, kind: input, shape index: {}]   ;;  %s2482_s4 = inlined_call_operand.vmem [shape: f32[4,64], index: 4, kind: input, shape index: {}]   ;;  %s2483_s5 = inlined_call_operand.vmem [shape: f32[256,32], index: 5, kind: input, shape index: {}]   ;;  %s2484_s6 = inlined_call_operand.vmem [shape: f32[1,32], index: 6, kind: input, shape index: {}]   ;;  %s2485_s7 = inlined_call_operand.vmem [shape: f32[32,16], index: 7, kind: input, shape index: {}]   ;;  %s2486_s8 = inlined_call_operand.vmem [shape: f32[1,16], index: 8, kind: input, shape index: {}]   ;;  %s2487_s9 = inlined_call_operand.hbm [shape: f32[2,16], index: 9, kind: output, shape index: {}]  }
   0x1   :  { %v49_v0 = vld [vmem:[%s2479_s1] sm:$0xff]  ;;  %v50_v1 = vld [vmem:[%s2479_s1 + $0x8] sm:$0xff]  ;;  %v51_v2 = vld [vmem:[%s2479_s1 + $0x10] sm:$0xff] }
   0x2   :  { %v1439_v3 = vpack.c.bf16 %v50_v1, %v49_v0  ;;  %v52_v4 = vld [vmem:[%s2479_s1 + $0x18] sm:$0xff]  ;;  %v33_v5 = vld [vmem:[%s2478_s0] sm:$0xff] }
   0x3   :  { %v1443_v6 = vpack.c.bf16 %v52_v4, %v51_v2  ;;  %1369 = vmatprep.mubr.msk.f32.mxu0 %vm53_vm0, %v33_v5 }
   0x4   :  { %1440 = vmatprep.subr.bf16.mxu0 %v1439_v3 }
   0x5   :  { %1442 = vmatpush3.bf16.msra.mxu0 %v1439_v3 }
   0x6   :  { %1444 = vmatprep.subr.bf16.mxu0 %v1443_v6 }
   0x7   :  { %14 = vsyncpa [#allocation3], 0  ;;  %v34_v7 = vld [vmem:[%s2478_s0 + $0x8] sm:$0xff]  ;;  %v35_v8 = vld [vmem:[%s2478_s0 + $0x10] sm:$0xff]  ;;  %v1655_v22 = vmov 0.0   ;;  %s1656_s26 = smov 16  }
   0x8   :  { %v36_v9 = vld [vmem:[%s2478_s0 + $0x18] sm:$0xff]  ;;  %v37_v10 = vld [vmem:[%s2478_s0 + $0x20] sm:$0xff]  ;;  %v38_v11 = vld [vmem:[%s2478_s0 + $0x28] sm:$0xff]  ;;  %294 = vrot.lane.b32.xlu0 %v1655_v22, %s1656_s26  ;;  %s1657_s17 = smov 48   ;;  %s1658_s18 = smov 32   ;;  %vm394_vm1 = vcmask 130048  }
   0x9   :  { %1446 = vmatpush3.bf16.msra.mxu0 %v1443_v6  ;;  %v39_v12 = vld [vmem:[%s2478_s0 + $0x30] sm:$0xff]  ;;  %v40_v13 = vld [vmem:[%s2478_s0 + $0x38] sm:$0xff]  ;;  %v41_v14 = vld [vmem:[%s2478_s0 + $0x40] sm:$0xff]  ;;  %s1659_s21 = smov 64   ;;  %vm419_vm2 = vcmask 523264   ;;  %vm410_vm3 = vcmask 392192  }
   0xa   :  { %v42_v15 = vld [vmem:[%s2478_s0 + $0x48] sm:$0xff]  ;;  %v43_v16 = vld [vmem:[%s2478_s0 + $0x50] sm:$0xff]  ;;  %v44_v17 = vld [vmem:[%s2478_s0 + $0x58] sm:$0xff]  ;;  %vm437_vm4 = vcmask 1041409   ;;  %vm440_vm5 = vcmask 1042434   ;;  %vm443_vm6 = vcmask 1043459  }
   0xb   :  { %v45_v18 = vld [vmem:[%s2478_s0 + $0x60] sm:$0xff]  ;;  %v46_v19 = vld [vmem:[%s2478_s0 + $0x68] sm:$0xff]  ;;  %v47_v20 = vld [vmem:[%s2478_s0 + $0x70] sm:$0xff]  ;;  %s1660_s19 = smov 80   ;;  %vm587_vm7 = vcmask 654336   ;;  %vm592_vm8 = vcmask 916480  }
   0xc   :  { %1370 = vmatmul.mubr.msk.f32.vlgmr.msra.gmra.mrb[0].mxu0 %vm53_vm0, %v34_v7  ;;  %v48_v21 = vld [vmem:[%s2478_s0 + $0x78] sm:$0xff]  ;;  %v1797_v23 = vld [vmem:[%s2480_s2 + $0x8] sm:$0xff]  ;;  %v1802_v24 = vld [vmem:[%s2480_s2] sm:$0xff]  ;;  %vm1664_vm9 = vmmov 0   ;;  %vm599_vm10 = vcmask 785408   ;;  %vm1174_vm11 = vcmask 123904  }
   0xd   :  { %1372 = vmatprep.mubr.msk.f32.mxu0 %vm53_vm0, %v35_v8  ;;  %v250_v29 = vld [vmem:[%s2480_s2 + $0x18] sm:$0xff]  ;;  %v249_v31 = vld [vmem:[%s2480_s2 + $0x10] sm:$0xff]  ;;  %v251_v36 = vld [vmem:[%s2480_s2 + $0x20] sm:$0xff] }
   0xe   :  { %v252_v39 = vld [vmem:[%s2480_s2 + $0x28] sm:$0xff]  ;;  %v254_v52 = vld [vmem:[%s2480_s2 + $0x38] sm:$0xff]  ;;  %v253_v58 = vld [vmem:[%s2480_s2 + $0x30] sm:$0xff]  ;;  %s1661_s2 = smov 112  }
  0x10   :  { %1373 = vmatmul.mubr.msk.f32.gmra.mrb[2].mxu0 %vm53_vm0, %v36_v9 }
  0x11   :  { %1375 = vmatprep.mubr.msk.f32.mxu0 %vm53_vm0, %v37_v10 }
  0x14   :  { %1376 = vmatmul.mubr.msk.f32.gmra.mrb[4].mxu0 %vm53_vm0, %v38_v11 }
  0x15   :  { %1378 = vmatprep.mubr.msk.f32.mxu0 %vm53_vm0, %v39_v12 }
  0x18   :  { %1379 = vmatmul.mubr.msk.f32.gmra.mrb[6].mxu0 %vm53_vm0, %v40_v13 }
  0x19   :  { %1381 = vmatprep.mubr.msk.f32.mxu0 %vm53_vm0, %v41_v14 }
  0x1c   :  { %1382 = vmatmul.mubr.msk.f32.gmra.mrb[8].mxu0 %vm53_vm0, %v42_v15  ;;  %v634_v15 = vld [vmem:[%s2481_s3 + $0x80] sm:$0xff] }
  0x1d   :  { %1384 = vmatprep.mubr.msk.f32.mxu0 %vm53_vm0, %v43_v16  ;;  %v635_v16 = vld [vmem:[%s2481_s3 + $0x88] sm:$0xff] }
  0x20   :  { %1385 = vmatmul.mubr.msk.f32.gmra.mrb[10].mxu0 %vm53_vm0, %v44_v17  ;;  %v618_v17 = vld [vmem:[%s2481_s3] sm:$0xff] }
  0x21   :  { %1387 = vmatprep.mubr.msk.f32.mxu0 %vm53_vm0, %v45_v18  ;;  %v1447_v18 = vpack.c.bf16 %v635_v16, %v634_v15 }
  0x23   :  { %1448 = vmatprep.subr.bf16.mxu1 %v1447_v18 }
  0x24   :  { %1388 = vmatmul.mubr.msk.f32.gmra.mrb[12].mxu0 %vm53_vm0, %v46_v19  ;;  %v619_v19 = vld [vmem:[%s2481_s3 + $0x8] sm:$0xff] }
  0x25   :  { %1390 = vmatprep.mubr.msk.f32.mxu0 %vm53_vm0, %v47_v20  ;;  %v636_v20 = vld [vmem:[%s2481_s3 + $0x90] sm:$0xff] }
  0x28   :  { %1391 = vmatmul.mubr.msk.f32.gmra.mrb[14].mxu0 %vm53_vm0, %v48_v21  ;;  %v637_v21 = vld [vmem:[%s2481_s3 + $0x98] sm:$0xff] }
  0xdf   :  { %v1371_v25 = vpop.f32.mrb[0].mxu0 }
  0xe0   :  { %v256_v26 = vadd.f32 %v1371_v25, %v1797_v23  ;;  %v168_v27 = vpop.f32.mrb[1].mxu0  ;;  %v620_v25 = vld [vmem:[%s2481_s3 + $0x10] sm:$0xff] }
  0xe1   :  { %v255_v28 = vadd.f32 %v1802_v24, %v168_v27  ;;  %v638_v27 = vld [vmem:[%s2481_s3 + $0xa0] sm:$0xff] }
  0xe2   :  { %1589 = vtanh.f32 %v256_v26  ;;  %v621_v26 = vld [vmem:[%s2481_s3 + $0x18] sm:$0xff] }
  0xe3   :  { %v1374_v30 = vpop.f32.mrb[2].mxu0  ;;  %1591 = vtanh.f32 %v255_v28  ;;  %v639_v28 = vld [vmem:[%s2481_s3 + $0xa8] sm:$0xff] }
  0xe4   :  { %v258_v32 = vadd.f32 %v1374_v30, %v250_v29  ;;  %v178_v33 = vpop.f32.mrb[3].mxu0  ;;  %v622_v30 = vld [vmem:[%s2481_s3 + $0x20] sm:$0xff] }
  0xe5   :  { %v257_v34 = vadd.f32 %v249_v31, %v178_v33  ;;  %v640_v33 = vld [vmem:[%s2481_s3 + $0xb0] sm:$0xff] }
  0xe6   :  { %1593 = vtanh.f32 %v258_v32  ;;  %v1455_v32 = vpack.c.bf16 %v639_v28, %v638_v27 }
  0xe7   :  { %v1377_v35 = vpop.f32.mrb[4].mxu0  ;;  %1595 = vtanh.f32 %v257_v34  ;;  %v666_v34 = vld [vmem:[%s2481_s3 + $0x180] sm:$0xff] }
  0xe8   :  { %v188_v37 = vpop.f32.mrb[5].mxu0  ;;  %v260_v43 = vadd.f32 %v1377_v35, %v252_v39  ;;  %v667_v35 = vld [vmem:[%s2481_s3 + $0x188] sm:$0xff] }
  0xe9   :  { %v259_v38 = vadd.f32 %v251_v36, %v188_v37  ;;  %v1479_v37 = vpack.c.bf16 %v667_v35, %v666_v34 }
  0xeb   :  { %v1380_v40 = vpop.f32.mrb[6].mxu0  ;;  %1597 = vtanh.f32 %v259_v38  ;;  %v650_v38 = vld [vmem:[%s2481_s3 + $0x100] sm:$0xff]  ;;  %1480 = vmatprep.subr.bf16.mxu0 %v1479_v37 }
  0xec   :  { %v1590_v41 = vpop.eup %1589  ;;  %v198_v42 = vpop.f32.mrb[7].mxu0  ;;  %1599 = vtanh.f32 %v260_v43  ;;  %v262_v56 = vadd.f32 %v1380_v40, %v254_v52  ;;  %v669_v43 = vld [vmem:[%s2481_s3 + $0x198] sm:$0xff] }
  0xed   :  { %349 = vrot.lane.b32.xlu1 %v1590_v41, %s1657_s17  ;;  %296 = vrot.lane.b32.xlu0 %v1590_v41, %s1656_s26  ;;  %v1820_v44 = vpop.eup %1591  ;;  %v261_v63 = vadd.f32 %v253_v58, %v198_v42  ;;  %v668_v42 = vld [vmem:[%s2481_s3 + $0x190] sm:$0xff] }
  0xef   :  { %v1383_v45 = vpop.f32.mrb[8].mxu0 }
  0xf0   :  { %v1594_v46 = vpop.eup %1593  ;;  %v208_v47 = vpop.f32.mrb[9].mxu0  ;;  %v264_v1 = vadd.f32 %v1383_v45, %v1797_v23  ;;  %v1449_v23 = vpack.c.bf16 %v619_v19, %v618_v17  ;;  %v652_v45 = vld [vmem:[%s2481_s3 + $0x110] sm:$0xff] }
  0xf1   :  { %323 = vrot.lane.b32.xlu1 %v1820_v44, %s1658_s18  ;;  %351 = vrot.lane.b32.xlu0 %v1594_v46, %s1657_s17  ;;  %v1825_v49 = vpop.eup %1595  ;;  %v263_v8 = vadd.f32 %v1802_v24, %v208_v47  ;;  %v1451_v24 = vpack.c.bf16 %v637_v21, %v636_v20  ;;  %v624_v47 = vld [vmem:[%s2481_s3 + $0x30] sm:$0xff] }
  0xf2   :  { %1450 = vmatpush3.bf16.msra.mxu1 %v1449_v23 }
  0xf3   :  { %v1386_v48 = vpop.f32.mrb[10].mxu0  ;;  %1452 = vmatprep.subr.bf16.mxu1 %v1451_v24 }
  0xf4   :  { %v266_v50 = vadd.f32 %v1386_v48, %v250_v29  ;;  %v218_v51 = vpop.f32.mrb[11].mxu0  ;;  %v1453_v29 = vpack.c.bf16 %v621_v26, %v620_v25  ;;  %v625_v48 = vld [vmem:[%s2481_s3 + $0x38] sm:$0xff] }
  0xf5   :  { %298 = vrot.lane.b32.xlu1 %v1594_v46, %s1656_s26  ;;  %325 = vrot.lane.b32.xlu0 %v1825_v49, %s1658_s18  ;;  %v1833_v54 = vpop.eup %1597  ;;  %v265_v57 = vadd.f32 %v249_v31, %v218_v51  ;;  %v623_v31 = vld [vmem:[%s2481_s3 + $0x28] sm:$0xff]  ;;  %v653_v51 = vld [vmem:[%s2481_s3 + $0x118] sm:$0xff] }
  0xf6   :  { %1601 = vtanh.f32 %v266_v50  ;;  %v1600_v60 = vpop.eup %1599  ;;  %1454 = vmatpush3.bf16.msra.mxu1 %v1453_v29  ;;  %v1457_v41 = vpack.c.bf16 %v623_v31, %v622_v30  ;;  %v1483_v50 = vpack.c.bf16 %v669_v43, %v668_v42 }
  0xf7   :  { %v1389_v53 = vpop.f32.mrb[12].mxu0  ;;  %1603 = vtanh.f32 %v262_v56  ;;  %1456 = vmatprep.subr.bf16.mxu1 %v1455_v32  ;;  %v1461_v56 = vpack.c.bf16 %v625_v48, %v624_v47 }
  0xf8   :  { %v228_v55 = vpop.f32.mrb[13].mxu0  ;;  %v268_v61 = vadd.f32 %v1389_v53, %v252_v39  ;;  %1605 = vtanh.f32 %v265_v57  ;;  %v651_v39 = vld [vmem:[%s2481_s3 + $0x108] sm:$0xff] }
  0xf9   :  { %373 = vrot.lane.b32.xlu1 %v1825_v49, %s1659_s21  ;;  %375 = vrot.lane.b32.xlu0 %v1833_v54, %s1659_s21  ;;  %v267_v2 = vadd.f32 %v251_v36, %v228_v55  ;;  %v641_v36 = vld [vmem:[%s2481_s3 + $0xb8] sm:$0xff]  ;;  %v1481_v40 = vpack.c.bf16 %v651_v39, %v650_v38  ;;  %v643_v53 = vld [vmem:[%s2481_s3 + $0xc8] sm:$0xff]  ;;  %v1485_v55 = vpack.c.bf16 %v653_v51, %v652_v45 }
  0xfa   :  { %1607 = vtanh.f32 %v268_v61  ;;  %v1459_v46 = vpack.c.bf16 %v641_v36, %v640_v33  ;;  %1458 = vmatpush3.bf16.msra.mxu1 %v1457_v41  ;;  %v295_v61 = vpop.permute.xlu0 %294  ;;  %v644_v45 = vld [vmem:[%s2481_s3 + $0xd0] sm:$0xff] }
  0xfb   :  { %v1392_v59 = vpop.f32.mrb[14].mxu0  ;;  %1609 = vtanh.f32 %v261_v63  ;;  %1482 = vmatpush3.bf16.msra.mxu0 %v1481_v40 }
  0xfc   :  { %v238_v62 = vpop.f32.mrb[15].mxu0  ;;  %1611 = vtanh.f32 %v264_v1  ;;  %v270_v7 = vadd.f32 %v1392_v59, %v254_v52  ;;  %v642_v52 = vld [vmem:[%s2481_s3 + $0xc0] sm:$0xff]  ;;  %1484 = vmatprep.subr.bf16.mxu0 %v1483_v50  ;;  %1460 = vmatprep.subr.bf16.mxu1 %v1459_v46  ;;  %v627_v59 = vld [vmem:[%s2481_s3 + $0x48] sm:$0xff]  ;;  %v645_v46 = vld [vmem:[%s2481_s3 + $0xd8] sm:$0xff] }
  0xfd   :  { %300 = vrot.lane.b32.xlu1 %v1600_v60, %s1656_s26  ;;  %1613 = vtanh.f32 %v267_v2  ;;  %v269_v9 = vadd.f32 %v253_v58, %v238_v62  ;;  %v1463_v57 = vpack.c.bf16 %v643_v53, %v642_v52  ;;  %v626_v58 = vld [vmem:[%s2481_s3 + $0x40] sm:$0xff]  ;;  %v1467_v48 = vpack.c.bf16 %v645_v46, %v644_v45 }
  0xfe   :  { %1615 = vtanh.f32 %v270_v7  ;;  %1462 = vmatpush3.bf16.msra.mxu1 %v1461_v56  ;;  %v629_v56 = vld [vmem:[%s2481_s3 + $0x58] sm:$0xff] }
  0xff   :  { %1617 = vtanh.f32 %v263_v8  ;;  %1486 = vmatpush3.bf16.msra.mxu0 %v1485_v55  ;;  %1464 = vmatprep.subr.bf16.mxu1 %v1463_v57  ;;  %v628_v55 = vld [vmem:[%s2481_s3 + $0x50] sm:$0xff]  ;;  %v670_v57 = vld [vmem:[%s2481_s3 + $0x1a0] sm:$0xff] }
 0x100   :  { %v1602_v0 = vpop.eup %1601  ;;  %1619 = vtanh.f32 %v269_v9  ;;  %v395_v9 = vsel %vm394_vm1, 0.0, %v295_v61  ;;  %v671_v61 = vld [vmem:[%s2481_s3 + $0x1a8] sm:$0xff] }
 0x101   :  { %353 = vrot.lane.b32.xlu1 %v1600_v60, %s1657_s17  ;;  %304 = vrot.lane.b32.xlu0 %v1602_v0, %s1656_s26  ;;  %v1604_v3 = vpop.eup %1603  ;;  %v1465_v60 = vpack.c.bf16 %v627_v59, %v626_v58 }
 0x102   :  { %v1849_v4 = vpop.eup %1605 }
 0x103   :  { %1466 = vmatpush3.bf16.msra.mxu1 %v1465_v60  ;;  %v1469_v60 = vpack.c.bf16 %v629_v56, %v628_v55 }
 0x104   :  { %v1608_v5 = vpop.eup %1607  ;;  %1468 = vmatprep.subr.bf16.mxu1 %v1467_v48 }
 0x105   :  { %327 = vrot.lane.b32.xlu1 %v1833_v54, %s1658_s18  ;;  %359 = vrot.lane.b32.xlu0 %v1602_v0, %s1657_s17  ;;  %v1610_v6 = vpop.eup %1609 }
 0x106   :  { %v1612_v10 = vpop.eup %1611 }
 0x107   :  { %v1859_v11 = vpop.eup %1613  ;;  %1470 = vmatpush3.bf16.msra.mxu1 %v1469_v60 }
 0x108   :  { %v1616_v12 = vpop.eup %1615 }
 0x109   :  { %355 = vrot.lane.b32.xlu1 %v1604_v3, %s1657_s17  ;;  %333 = vrot.lane.b32.xlu0 %v1849_v4, %s1658_s18  ;;  %v1867_v13 = vpop.eup %1617 }
 0x10a   :  { %v1620_v14 = vpop.eup %1619 }
 0x10d   :  { %329 = vrot.lane.b32.xlu1 %v1610_v6, %s1658_s18  ;;  %306 = vrot.lane.b32.xlu0 %v1608_v5, %s1656_s26 }
 0x111   :  { %377 = vrot.lane.b32.xlu1 %v1610_v6, %s1659_s21  ;;  %361 = vrot.lane.b32.xlu0 %v1608_v5, %s1657_s17 }
 0x115   :  { %302 = vrot.lane.b32.xlu1 %v1612_v10, %s1656_s26  ;;  %335 = vrot.lane.b32.xlu0 %v1859_v11, %s1658_s18 }
 0x119   :  { %357 = vrot.lane.b32.xlu1 %v1612_v10, %s1657_s17  ;;  %383 = vrot.lane.b32.xlu0 %v1859_v11, %s1659_s21 }
 0x11d   :  { %331 = vrot.lane.b32.xlu1 %v1867_v13, %s1658_s18  ;;  %363 = vrot.lane.b32.xlu0 %v1616_v12, %s1657_s17 }
 0x121   :  { %381 = vrot.lane.b32.xlu1 %v1849_v4, %s1659_s21  ;;  %337 = vrot.lane.b32.xlu0 %v1620_v14, %s1658_s18 }
 0x125   :  { %379 = vrot.lane.b32.xlu1 %v1655_v22, %s1659_s21  ;;  %385 = vrot.lane.b32.xlu0 %v1620_v14, %s1659_s21 }
 0x15f   :  { %v350_v62 = vpop.permute.xlu1 %349  ;;  %v297_v63 = vpop.permute.xlu0 %296 }
 0x160   :  { %v396_v5 = vsel %vm394_vm1, %v1820_v44, %v297_v63 }
 0x163   :  { %v324_v0 = vpop.permute.xlu1 %323  ;;  %v352_v1 = vpop.permute.xlu0 %351 }
 0x164   :  { %v402_v12 = vsel %vm53_vm0, %v395_v9, %v324_v0 }
 0x165   :  { %v411_v16 = vsel %vm410_vm3, %v402_v12, %v350_v62  ;;  %v654_v62 = vld [vmem:[%s2481_s3 + $0x120] sm:$0xff] }
 0x167   :  { %v299_v2 = vpop.permute.xlu1 %298  ;;  %v326_v3 = vpop.permute.xlu0 %325 }
 0x168   :  { %v403_v6 = vsel %vm53_vm0, %v396_v5, %v326_v3  ;;  %v397_v26 = vsel %vm394_vm1, %v1825_v49, %v299_v2  ;;  %v1487_v3 = vpack.c.bf16 %v671_v61, %v670_v57 }
 0x169   :  { %v412_v10 = vsel %vm410_vm3, %v403_v6, %v352_v1  ;;  %v646_v6 = vld [vmem:[%s2481_s3 + $0xe0] sm:$0xff] }
 0x16a   :  { %1488 = vmatprep.subr.bf16.mxu0 %v1487_v3  ;;  %v630_v3 = vld [vmem:[%s2481_s3 + $0x60] sm:$0xff] }
 0x16b   :  { %v374_v7 = vpop.permute.xlu1 %373  ;;  %v376_v8 = vpop.permute.xlu0 %375 }
 0x16c   :  { %v1969_v14 = vsel %vm419_vm2, %v412_v10, %v376_v8  ;;  %v1974_v17 = vsel %vm419_vm2, %v411_v16, %v374_v7  ;;  %v647_v7 = vld [vmem:[%s2481_s3 + $0xe8] sm:$0xff] }
 0x16d   :  { %v436_v44 = vrot.slane %v1969_v14, 7  ;;  %v453_v47 = vrot.slane %v1974_v17, 1  ;;  %v471_v51 = vrot.slane %v1974_v17, 2  ;;  %v472_v52 = vrot.slane %v1969_v14, 1 }
 0x16e   :  { %v489_v53 = vrot.slane %v1974_v17, 3  ;;  %v1471_v10 = vpack.c.bf16 %v647_v7, %v646_v6  ;;  %v490_v12 = vrot.slane %v1969_v14, 2  ;;  %v508_v16 = vrot.slane %v1969_v14, 3  ;;  %v672_v6 = vld [vmem:[%s2481_s3 + $0x1b0] sm:$0xff] }
 0x16f   :  { %v301_v15 = vpop.permute.xlu1 %300  ;;  %v438_v20 = vsel %vm437_vm4, %v436_v44, %v1974_v17  ;;  %v547_v60 = vrot.slane %v1974_v17, 6 }
 0x170   :  { %v398_v50 = vsel %vm394_vm1, %v1833_v54, %v301_v15  ;;  %v507_v15 = vrot.slane %v1974_v17, 4  ;;  %1472 = vmatprep.subr.bf16.mxu1 %v1471_v10 }
 0x173   :  { %v354_v18 = vpop.permute.xlu1 %353  ;;  %v305_v19 = vpop.permute.xlu0 %304 }
 0x174   :  { %v400_v54 = vsel %vm394_vm1, %v1849_v4, %v305_v19  ;;  %v655_v4 = vld [vmem:[%s2481_s3 + $0x128] sm:$0xff] }
 0x175   :  { %v1489_v5 = vpack.c.bf16 %v655_v4, %v654_v62  ;;  %v509_v4 = vsel %vm437_vm4, %v508_v16, %v507_v15  ;;  %v656_v15 = vld [vmem:[%s2481_s3 + $0x130] sm:$0xff]  ;;  %v657_v16 = vld [vmem:[%s2481_s3 + $0x138] sm:$0xff] }
 0x177   :  { %v328_v21 = vpop.permute.xlu1 %327  ;;  %v360_v23 = vpop.permute.xlu0 %359  ;;  %1490 = vmatpush3.bf16.msra.mxu0 %v1489_v5  ;;  %v631_v5 = vld [vmem:[%s2481_s3 + $0x68] sm:$0xff] }
 0x178   :  { %v404_v29 = vsel %vm53_vm0, %v397_v26, %v328_v21  ;;  %v527_v21 = vrot.slane %v1974_v17, 5 }
 0x179   :  { %v413_v30 = vsel %vm410_vm3, %v404_v29, %v354_v18 }
 0x17b   :  { %v1978_v24 = vpop.permute.xlu1 %355  ;;  %v334_v25 = vpop.permute.xlu0 %333 }
 0x17f   :  { %v330_v27 = vpop.permute.xlu1 %329  ;;  %v307_v28 = vpop.permute.xlu0 %306 }
 0x180   :  { %v405_v58 = vsel %vm53_vm0, %v398_v50, %v330_v27  ;;  %v401_v63 = vsel %vm394_vm1, %v1859_v11, %v307_v28  ;;  %v528_v50 = vrot.slane %v1969_v14, 4 }
 0x183   :  { %v378_v31 = vpop.permute.xlu1 %377  ;;  %v1984_v32 = vpop.permute.xlu0 %361 }
 0x184   :  { %v1987_v33 = vsel %vm419_vm2, %v413_v30, %v378_v31 }
 0x185   :  { %v439_v34 = vrot.slane %v1987_v33, 6  ;;  %v455_v18 = vrot.slane %v1987_v33, 7  ;;  %v510_v56 = vrot.slane %v1987_v33, 2 }
 0x187   :  { %v303_v35 = vpop.permute.xlu1 %302  ;;  %v336_v36 = vpop.permute.xlu0 %335  ;;  %v1993_v37 = vsel %vm440_vm5, %v439_v34, %v438_v20 }
 0x188   :  { %v399_v49 = vsel %vm394_vm1, %v1867_v13, %v303_v35  ;;  %v408_v8 = vsel %vm53_vm0, %v400_v54, %v336_v36  ;;  %v454_v35 = vsel %vm437_vm4, %v1969_v14, %v453_v47  ;;  %v491_v54 = vsel %vm437_vm4, %v490_v12, %v489_v53  ;;  %v673_v12 = vld [vmem:[%s2481_s3 + $0x1b8] sm:$0xff] }
 0x189   :  { %v407_v40 = vsel %vm53_vm0, %v399_v49, %v334_v25  ;;  %v417_v27 = vsel %vm410_vm3, %v408_v8, %v1984_v32  ;;  %v511_v8 = vsel %vm440_vm5, %v510_v56, %v509_v4 }
 0x18a   :  { %v416_v41 = vsel %vm410_vm3, %v407_v40, %v360_v23  ;;  %v414_v23 = vsel %vm410_vm3, %v405_v58, %v1978_v24  ;;  %v473_v40 = vsel %vm437_vm4, %v472_v52, %v471_v51  ;;  %v492_v52 = vrot.slane %v1987_v33, 1 }
 0x18b   :  { %v358_v38 = vpop.permute.xlu1 %357  ;;  %v384_v39 = vpop.permute.xlu0 %383  ;;  %v474_v57 = vsel %vm440_vm5, %v1987_v33, %v473_v40  ;;  %v1473_v40 = vpack.c.bf16 %v631_v5, %v630_v3  ;;  %v548_v3 = vrot.slane %v1969_v14, 5 }
 0x18c   :  { %v2023_v59 = vsel %vm419_vm2, %v416_v41, %v384_v39  ;;  %v493_v7 = vsel %vm440_vm5, %v492_v52, %v491_v54 }
 0x18d   :  { %v445_v44 = vrot.slane %v2023_v59, 7  ;;  %v478_v24 = vrot.slane %v2023_v59, 1  ;;  %v496_v55 = vrot.slane %v2023_v59, 2  ;;  %v515_v53 = vrot.slane %v2023_v59, 3  ;;  %1474 = vmatpush3.bf16.msra.mxu1 %v1473_v40 }
 0x18e   :  { %v535_v10 = vrot.slane %v2023_v59, 4 }
 0x18f   :  { %v332_v42 = vpop.permute.xlu1 %331  ;;  %v364_v43 = vpop.permute.xlu0 %363 }
 0x190   :  { %v406_v13 = vsel %vm53_vm0, %v395_v9, %v332_v42 }
 0x191   :  { %v415_v0 = vsel %vm410_vm3, %v406_v13, %v358_v38  ;;  %v456_v38 = vsel %vm440_vm5, %v455_v18, %v454_v35 }
 0x193   :  { %v382_v1 = vpop.permute.xlu1 %381  ;;  %v338_v2 = vpop.permute.xlu0 %337 }
 0x194   :  { %v2045_v9 = vsel %vm419_vm2, %v415_v0, %v382_v1  ;;  %v409_v11 = vsel %vm53_vm0, %v401_v63, %v338_v2  ;;  %v530_v63 = vrot.slane %v1987_v33, 3 }
 0x195   :  { %v459_v19 = vrot.slane %v2045_v9, 1  ;;  %v477_v20 = vrot.slane %v2045_v9, 2  ;;  %v418_v26 = vsel %vm410_vm3, %v409_v11, %v364_v43  ;;  %v2063_v29 = vsel %vm437_vm4, %v445_v44, %v2045_v9 }
 0x196   :  { %v495_v46 = vrot.slane %v2045_v9, 3  ;;  %v514_v58 = vrot.slane %v2045_v9, 4  ;;  %v534_v11 = vrot.slane %v2045_v9, 5 }
 0x197   :  { %v380_v25 = vpop.permute.xlu1 %379  ;;  %v386_v28 = vpop.permute.xlu0 %385  ;;  %v460_v39 = vsel %vm437_vm4, %v2023_v59, %v459_v19  ;;  %v479_v41 = vsel %vm437_vm4, %v478_v24, %v477_v20 }
 0x198   :  { %v2066_v30 = vsel %vm419_vm2, %v414_v23, %v380_v25  ;;  %v2069_v31 = vsel %vm419_vm2, %v418_v26, %v380_v25  ;;  %v2072_v34 = vsel %vm419_vm2, %v417_v27, %v386_v28  ;;  %v497_v62 = vsel %vm437_vm4, %v496_v55, %v495_v46  ;;  %v648_v23 = vld [vmem:[%s2481_s3 + $0xf0] sm:$0xff]  ;;  %v649_v25 = vld [vmem:[%s2481_s3 + $0xf8] sm:$0xff] }
 0x199   :  { %v457_v32 = vrot.slane %v2066_v30, 6  ;;  %v461_v36 = vrot.slane %v2072_v34, 7  ;;  %v463_v49 = vrot.slane %v2069_v31, 6  ;;  %v475_v45 = vrot.slane %v2066_v30, 7  ;;  %v632_v26 = vld [vmem:[%s2481_s3 + $0x70] sm:$0xff] }
 0x19a   :  { %v481_v47 = vrot.slane %v2069_v31, 7  ;;  %v498_v48 = vrot.slane %v2072_v34, 1  ;;  %v480_v51 = vsel %vm440_vm5, %v2072_v34, %v479_v41  ;;  %v517_v2 = vrot.slane %v2072_v34, 2 }
 0x19b   :  { %v458_v42 = vsel %vm443_vm6, %v457_v32, %v456_v38  ;;  %v462_v43 = vsel %vm440_vm5, %v461_v36, %v460_v39  ;;  %v476_v61 = vsel %vm443_vm6, %v475_v45, %v474_v57  ;;  %v494_v44 = vsel %vm443_vm6, %v2066_v30, %v493_v7  ;;  %v633_v32 = vld [vmem:[%s2481_s3 + $0x78] sm:$0xff]  ;;  %v674_v36 = vld [vmem:[%s2481_s3 + $0x1c0] sm:$0xff]  ;;  %v679_v7 = vld [vmem:[%s2481_s3 + $0x1e8] sm:$0xff] }
 0x19c   :  { %465 = vrot.lane.b32.xlu0 %v458_v42, %s1660_s19  ;;  %v464_v13 = vsel %vm443_vm6, %v463_v49, %v462_v43  ;;  %v482_v0 = vsel %vm443_vm6, %v481_v47, %v480_v51  ;;  %v499_v1 = vsel %vm440_vm5, %v498_v48, %v497_v62  ;;  %v512_v18 = vrot.slane %v2066_v30, 1  ;;  %v675_v49 = vld [vmem:[%s2481_s3 + $0x1c8] sm:$0xff]  ;;  %v658_v42 = vld [vmem:[%s2481_s3 + $0x140] sm:$0xff]  ;;  %v677_v48 = vld [vmem:[%s2481_s3 + $0x1d8] sm:$0xff] }
 0x19d   :  { %467 = vrot.lane.b32.xlu1 %v464_v13, %s1660_s19  ;;  %v516_v19 = vsel %vm437_vm4, %v515_v53, %v514_v58  ;;  %v442_v20 = vrot.slane %v2066_v30, 5  ;;  %v500_v27 = vsel %vm443_vm6, %v2069_v31, %v499_v1  ;;  %v519_v28 = vrot.slane %v2069_v31, 1  ;;  %v659_v43 = vld [vmem:[%s2481_s3 + $0x148] sm:$0xff]  ;;  %v661_v1 = vld [vmem:[%s2481_s3 + $0x158] sm:$0xff] }
 0x19e   :  { %v449_v24 = vrot.slane %v2069_v31, 5  ;;  %v447_v35 = vrot.slane %v2072_v34, 6  ;;  %v518_v38 = vsel %vm440_vm5, %v517_v2, %v516_v19  ;;  %v1491_v41 = vpack.c.bf16 %v673_v12, %v672_v6  ;;  %v678_v6 = vld [vmem:[%s2481_s3 + $0x1e0] sm:$0xff] }
 0x19f   :  { %v2168_v39 = vsel %vm443_vm6, %v442_v20, %v1993_v37  ;;  %v537_v45 = vrot.slane %v2072_v34, 3  ;;  %v1493_v13 = vpack.c.bf16 %v657_v16, %v656_v15  ;;  %v1475_v47 = vpack.c.bf16 %v649_v25, %v648_v23  ;;  %v676_v37 = vld [vmem:[%s2481_s3 + $0x1d0] sm:$0xff]  ;;  %v662_v23 = vld [vmem:[%s2481_s3 + $0x160] sm:$0xff] }
 0x1a0   :  { %483 = vrot.lane.b32.xlu0 %v476_v61, %s1658_s18  ;;  %v448_v46 = vsel %vm440_vm5, %v447_v35, %v2063_v29  ;;  %v554_v51 = vrot.slane %v2045_v9, 6  ;;  %1492 = vmatprep.subr.bf16.mxu0 %v1491_v41  ;;  %v1477_v55 = vpack.c.bf16 %v633_v32, %v632_v26  ;;  %v1495_v56 = vpack.c.bf16 %v675_v49, %v674_v36  ;;  %v681_v35 = vld [vmem:[%s2481_s3 + $0x1f8] sm:$0xff] }
 0x1a1   :  { %485 = vrot.lane.b32.xlu1 %v482_v0, %s1658_s18  ;;  %v2187_v52 = vsel %vm443_vm6, %v449_v24, %v448_v46  ;;  %v513_v29 = vsel %vm443_vm6, %v512_v18, %v511_v8  ;;  %v532_v57 = vrot.slane %v2066_v30, 2  ;;  %v536_v54 = vsel %vm437_vm4, %v535_v10, %v534_v11  ;;  %1494 = vmatpush3.bf16.msra.mxu0 %v1493_v13  ;;  %v660_v0 = vld [vmem:[%s2481_s3 + $0x150] sm:$0xff] }
 0x1a2   :  { %1476 = vmatprep.subr.bf16.mxu1 %v1475_v47  ;;  %v1497_v58 = vpack.c.bf16 %v659_v43, %v658_v42  ;;  %v520_v61 = vsel %vm443_vm6, %v519_v28, %v518_v38  ;;  %v539_v62 = vrot.slane %v2069_v31, 2  ;;  %1496 = vmatprep.subr.bf16.mxu0 %v1495_v56  ;;  %v1499_v4 = vpack.c.bf16 %v677_v48, %v676_v37  ;;  %v680_v24 = vld [vmem:[%s2481_s3 + $0x1f0] sm:$0xff] }
 0x1a3   :  { %v529_v53 = vsel %vm437_vm4, %v528_v50, %v527_v21  ;;  %v538_v2 = vsel %vm440_vm5, %v537_v45, %v536_v54  ;;  %v557_v5 = vrot.slane %v2072_v34, 4  ;;  %v550_v21 = vrot.slane %v1987_v33, 4  ;;  %1478 = vmatpush3.bf16.msra.mxu1 %v1477_v55  ;;  %v682_v54 = vld [vmem:[%s2481_s3 + $0x200] sm:$0xff] }
 0x1a4   :  { %501 = vrot.lane.b32.xlu0 %v494_v44, %s1661_s2  ;;  %v531_v8 = vsel %vm440_vm5, %v530_v63, %v529_v53  ;;  %v555_v50 = vrot.slane %v2023_v59, 5  ;;  %v567_v11 = vrot.slane %v1974_v17, 7  ;;  %v552_v12 = vrot.slane %v2066_v30, 3  ;;  %v684_v53 = vld [vmem:[%s2481_s3 + $0x210] sm:$0xff] }
 0x1a5   :  { %503 = vrot.lane.b32.xlu1 %v500_v27, %s1661_s2  ;;  %v533_v10 = vsel %vm443_vm6, %v532_v57, %v531_v8  ;;  %v574_v15 = vrot.slane %v2045_v9, 7  ;;  %1498 = vmatpush3.bf16.msra.mxu0 %v1497_v58  ;;  %v1662_v16 = vmov 0.0|0.0   ;;  %v1501_v44 = vpack.c.bf16 %v661_v1, %v660_v0  ;;  %v663_v9 = vld [vmem:[%s2481_s3 + $0x168] sm:$0xff] }
 0x1a6   :  { %1511 = vmatprep.subr.bf16.mxu1 %v1662_v16  ;;  %v540_v63 = vsel %vm443_vm6, %v539_v62, %v538_v2  ;;  %v556_v18 = vsel %vm437_vm4, %v555_v50, %v554_v51  ;;  %v559_v19 = vrot.slane %v2069_v31, 3  ;;  %1500 = vmatprep.subr.bf16.mxu0 %v1499_v4  ;;  %v1503_v20 = vpack.c.bf16 %v679_v7, %v678_v6  ;;  %v683_v58 = vld [vmem:[%s2481_s3 + $0x208] sm:$0xff]  ;;  %v685_v2 = vld [vmem:[%s2481_s3 + $0x218] sm:$0xff]  ;;  %v686_v7 = vld [vmem:[%s2481_s3 + $0x220] sm:$0xff] }
 0x1a7   :  { %v549_v25 = vsel %vm437_vm4, %v548_v3, %v547_v60  ;;  %v558_v26 = vsel %vm440_vm5, %v557_v5, %v556_v18  ;;  %v568_v27 = vrot.slane %v1969_v14, 6  ;;  %v577_v28 = vrot.slane %v2072_v34, 5  ;;  %v687_v8 = vld [vmem:[%s2481_s3 + $0x228] sm:$0xff] }
 0x1a8   :  { %521 = vrot.lane.b32.xlu0 %v513_v29, %s1659_s21  ;;  %v551_v32 = vsel %vm440_vm5, %v550_v21, %v549_v25  ;;  %v570_v17 = vrot.slane %v1987_v33, 5  ;;  %v575_v60 = vrot.slane %v2023_v59, 6  ;;  %v572_v14 = vrot.slane %v2066_v30, 4  ;;  %v664_v33 = vld [vmem:[%s2481_s3 + $0x170] sm:$0xff]  ;;  %v665_v59 = vld [vmem:[%s2481_s3 + $0x178] sm:$0xff] }
 0x1a9   :  { %523 = vrot.lane.b32.xlu1 %v520_v61, %s1659_s21  ;;  %v553_v36 = vsel %vm443_vm6, %v552_v12, %v551_v32  ;;  %1502 = vmatpush3.bf16.msra.mxu0 %v1501_v44  ;;  %v1505_v34 = vpack.c.bf16 %v663_v9, %v662_v23  ;;  %v560_v49 = vsel %vm443_vm6, %v559_v19, %v558_v26  ;;  %v579_v40 = vrot.slane %v2069_v31, 4  ;;  %v688_v12 = vld [vmem:[%s2481_s3 + $0x230] sm:$0xff]  ;;  %v693_v32 = vld [vmem:[%s2481_s3 + $0x258] sm:$0xff] }
 0x1aa   :  { %v576_v38 = vsel %vm437_vm4, %v575_v60, %v574_v15  ;;  %1504 = vmatprep.subr.bf16.mxu0 %v1503_v20  ;;  %v1507_v41 = vpack.c.bf16 %v681_v35, %v680_v24  ;;  %v569_v30 = vsel %vm437_vm4, %v568_v27, %v567_v11  ;;  %v1509_v31 = vpack.c.bf16 %v665_v59, %v664_v33  ;;  %v689_v15 = vld [vmem:[%s2481_s3 + $0x238] sm:$0xff]  ;;  %v690_v27 = vld [vmem:[%s2481_s3 + $0x240] sm:$0xff]  ;;  %v692_v35 = vld [vmem:[%s2481_s3 + $0x250] sm:$0xff] }
 0x1ab   :  { %v578_v42 = vsel %vm440_vm5, %v577_v28, %v576_v38  ;;  %v571_v43 = vsel %vm440_vm5, %v570_v17, %v569_v30  ;;  %v1512_v0 = vpack.c.bf16 %v683_v58, %v682_v54  ;;  %v1515_v5 = vpack.c.bf16 %v685_v2, %v684_v53  ;;  %v691_v28 = vld [vmem:[%s2481_s3 + $0x248] sm:$0xff]  ;;  %v694_v60 = vld [vmem:[%s2481_s3 + $0x260] sm:$0xff] }
 0x1ac   :  { %541 = vrot.lane.b32.xlu0 %v533_v10, %s1656_s26  ;;  %v573_v45 = vsel %vm443_vm6, %v572_v14, %v571_v43  ;;  %v580_v46 = vsel %vm443_vm6, %v579_v40, %v578_v42  ;;  %v1518_v50 = vpack.c.bf16 %v687_v8, %v686_v7  ;;  %v1521_v25 = vpack.c.bf16 %v689_v15, %v688_v12  ;;  %v990_v42 = vld [vmem:[%s2483_s5 + $0x80] sm:$0xff]  ;;  %v991_v43 = vld [vmem:[%s2483_s5 + $0x88] sm:$0xff]  ;;  %v1000_v7 = vld [vmem:[%s2483_s5 + $0xd0] sm:$0xff] }
 0x1ad   :  { %543 = vrot.lane.b32.xlu1 %v540_v63, %s1656_s26  ;;  %s1663_s26 = smov 96   ;;  %1506 = vmatpush3.bf16.msra.mxu0 %v1505_v34  ;;  %v1524_v24 = vpack.c.bf16 %v691_v28, %v690_v27  ;;  %v1527_v17 = vpack.c.bf16 %v693_v32, %v692_v35  ;;  %v696_v34 = vld [vmem:[%s2481_s3 + $0x270] sm:$0xff]  ;;  %v978_v54 = vld [vmem:[%s2483_s5 + $0x20] sm:$0xff]  ;;  %v979_v58 = vld [vmem:[%s2483_s5 + $0x28] sm:$0xff] }
 0x1ae   :  { %1508 = vmatprep.subr.bf16.mxu0 %v1507_v41  ;;  %v999_v53 = vld [vmem:[%s2483_s5 + $0xc8] sm:$0xff]  ;;  %v1001_v8 = vld [vmem:[%s2483_s5 + $0xd8] sm:$0xff]  ;;  %v1002_v12 = vld [vmem:[%s2483_s5 + $0xe0] sm:$0xff] }
 0x1af   :  { %v1003_v15 = vld [vmem:[%s2483_s5 + $0xe8] sm:$0xff]  ;;  %v921_v32 = vld [vmem:[%s2482_s4] sm:$0xf] }
 0x1b0   :  { %561 = vrot.lane.b32.xlu0 %v553_v36, %s1663_s26  ;;  %v695_v36 = vld [vmem:[%s2481_s3 + $0x268] sm:$0xff] }
 0x1b1   :  { %563 = vrot.lane.b32.xlu1 %v560_v49, %s1663_s26  ;;  %1510 = vmatpush3.bf16.msra.mxu0 %v1509_v31  ;;  %v1530_v14 = vpack.c.bf16 %v695_v36, %v694_v60  ;;  %v697_v49 = vld [vmem:[%s2481_s3 + $0x278] sm:$0xff]  ;;  %v1535_v31 = vpack.c.bf16 %v991_v43, %v990_v42 }
 0x1b2   :  { %v1533_v41 = vpack.c.bf16 %v697_v49, %v696_v34  ;;  %v928_v34 = vlaneseq }
 0x1b3   :  { %1536 = vmatprep.subr.bf16.mxu0 %v1535_v31 }
 0x1b4   :  { %581 = vrot.lane.b32.xlu0 %v573_v45, %s1657_s17  ;;  %v974_v45 = vld [vmem:[%s2483_s5] sm:$0xff] }
 0x1b5   :  { %583 = vrot.lane.b32.xlu1 %v580_v46, %s1657_s17  ;;  %v975_v46 = vld [vmem:[%s2483_s5 + $0x8] sm:$0xff] }
 0x20e   :  { %v466_v13 = vpop.permute.xlu0 %465 }
 0x20f   :  { %v588_v47 = vsel %vm587_vm7, %v2168_v39, %v466_v13  ;;  %v468_v37 = vpop.permute.xlu1 %467 }
 0x210   :  { %v589_v48 = vsel %vm587_vm7, %v2187_v52, %v468_v37 }
 0x211   :  { %v1206_v51 = vcombine.low %v588_v47, %v589_v48  ;;  %v1537_v47 = vpack.c.bf16 %v975_v46, %v974_v45  ;;  %v976_v48 = vld [vmem:[%s2483_s5 + $0x10] sm:$0xff] }
 0x212   :  { %v484_v55 = vpop.permute.xlu0 %483 }
 0x213   :  { %v486_v56 = vpop.permute.xlu1 %485  ;;  %v590_v29 = vsel %vm53_vm0, %v466_v13, %v484_v55  ;;  %v993_v13 = vld [vmem:[%s2483_s5 + $0x98] sm:$0xff]  ;;  %v994_v55 = vld [vmem:[%s2483_s5 + $0xa0] sm:$0xff] }
 0x214   :  { %v591_v39 = vsel %vm53_vm0, %v468_v37, %v486_v56  ;;  %v995_v56 = vld [vmem:[%s2483_s5 + $0xa8] sm:$0xff] }
 0x216   :  { %v502_v57 = vpop.permute.xlu0 %501 }
 0x217   :  { %v504_v61 = vpop.permute.xlu1 %503  ;;  %v593_v62 = vsel %vm592_vm8, %v590_v29, %v502_v57 }
 0x218   :  { %v594_v52 = vsel %vm592_vm8, %v591_v39, %v504_v61  ;;  %v996_v39 = vld [vmem:[%s2483_s5 + $0xb0] sm:$0xff] }
 0x219   :  { %v1207_v4 = vcombine.low %v593_v62, %v594_v52  ;;  %v1545_v62 = vpack.c.bf16 %v979_v58, %v978_v54 }
 0x21a   :  { %v522_v1 = vpop.permute.xlu0 %521 }
 0x21b   :  { %v524_v3 = vpop.permute.xlu1 %523  ;;  %772 = vmatprep.mubr.f32.mxu1 %v1207_v4  ;;  %v595_v44 = vsel %vm419_vm2, %v502_v57, %v522_v1  ;;  %v1543_v57 = vpack.c.bf16 %v995_v56, %v994_v55  ;;  %v980_v4 = vld [vmem:[%s2483_s5 + $0x30] sm:$0xff] }
 0x21c   :  { %773 = vmatmul.mubr.f32.vlgmr.msra.gmra.mrb[0].mxu1 %v1206_v51  ;;  %v596_v63 = vsel %vm419_vm2, %v504_v61, %v524_v3  ;;  %v977_v51 = vld [vmem:[%s2483_s5 + $0x18] sm:$0xff] }
 0x21d   :  { %1513 = vmatpush3.bf16.msra.mxu1 %v1512_v0  ;;  %1425 = vmatprep.mubr.msk.f32.mxu1 %vm1664_vm9, %v1655_v22  ;;  %v1208_v26 = vcombine.low %v595_v44, %v596_v63  ;;  %v1541_v29 = vpack.c.bf16 %v977_v51, %v976_v48  ;;  %v997_v61 = vld [vmem:[%s2483_s5 + $0xb8] sm:$0xff]  ;;  %v1559_v63 = vpack.c.bf16 %v1003_v15, %v1002_v12 }
 0x21e   :  { %v542_v6 = vpop.permute.xlu0 %541  ;;  %1514 = vmatprep.subr.bf16.mxu1 %v1662_v16  ;;  %v1547_v52 = vpack.c.bf16 %v997_v61, %v996_v39  ;;  %v981_v0 = vld [vmem:[%s2483_s5 + $0x38] sm:$0xff] }
 0x21f   :  { %v544_v21 = vpop.permute.xlu1 %543  ;;  %v597_v11 = vsel %vm394_vm1, %v522_v1, %v542_v6  ;;  %v998_v1 = vld [vmem:[%s2483_s5 + $0xc0] sm:$0xff]  ;;  %v1549_v2 = vpack.c.bf16 %v981_v0, %v980_v4  ;;  %v983_v6 = vld [vmem:[%s2483_s5 + $0x48] sm:$0xff] }
 0x220   :  { %v598_v18 = vsel %vm394_vm1, %v524_v3, %v544_v21  ;;  %v1551_v3 = vpack.c.bf16 %v999_v53, %v998_v1 }
 0x221   :  { %1516 = vmatpush3.bf16.msra.mxu1 %v1515_v5  ;;  %v982_v5 = vld [vmem:[%s2483_s5 + $0x40] sm:$0xff] }
 0x222   :  { %v562_v10 = vpop.permute.xlu0 %561  ;;  %1517 = vmatprep.subr.bf16.mxu1 %v1662_v16  ;;  %v1553_v21 = vpack.c.bf16 %v983_v6, %v982_v5  ;;  %v1086_v5 = vld [vmem:[%s2485_s7 + $0x10] sm:$0xff] }
 0x223   :  { %v600_v19 = vsel %vm599_vm10, %v597_v11, %v562_v10  ;;  %v564_v20 = vpop.permute.xlu1 %563  ;;  %v984_v11 = vld [vmem:[%s2483_s5 + $0x50] sm:$0xff] }
 0x224   :  { %v601_v23 = vsel %vm599_vm10, %v598_v18, %v564_v20  ;;  %v986_v18 = vld [vmem:[%s2483_s5 + $0x60] sm:$0xff] }
 0x225   :  { %v1209_v9 = vcombine.low %v600_v19, %v601_v23  ;;  %1519 = vmatpush3.bf16.msra.mxu1 %v1518_v50  ;;  %v1555_v50 = vpack.c.bf16 %v1001_v8, %v1000_v7  ;;  %v987_v19 = vld [vmem:[%s2483_s5 + $0x68] sm:$0xff]  ;;  %v1087_v7 = vld [vmem:[%s2485_s7 + $0x18] sm:$0xff] }
 0x226   :  { %1520 = vmatprep.subr.bf16.mxu1 %v1662_v16  ;;  %v582_v38 = vpop.permute.xlu0 %581  ;;  %v1571_v8 = vpack.c.bf16 %v1087_v7, %v1086_v5 }
 0x227   :  { %842 = vmatprep.mubr.f32.mxu0 %v1209_v9  ;;  %v584_v40 = vpop.permute.xlu1 %583  ;;  %v602_v33 = vsel %vm410_vm3, %v562_v10, %v582_v38  ;;  %v985_v10 = vld [vmem:[%s2483_s5 + $0x58] sm:$0xff]  ;;  %v929_v38 = vshrl.u32 %v928_v34, 7 }
 0x228   :  { %843 = vmatmul.mubr.f32.vlgmr.msra.gmra.mrb[16].mxu0 %v1208_v26  ;;  %v603_v59 = vsel %vm410_vm3, %v564_v20, %v584_v40  ;;  %v1557_v44 = vpack.c.bf16 %v985_v10, %v984_v11  ;;  %v1561_v20 = vpack.c.bf16 %v987_v19, %v986_v18  ;;  %v1004_v40 = vld [vmem:[%s2483_s5 + $0xf0] sm:$0xff] }
 0x229   :  { %1522 = vmatpush3.bf16.msra.mxu1 %v1521_v25  ;;  %v702_v30 = vcombine.low %v602_v33, %v603_v59  ;;  %1538 = vmatpush3.bf16.msra.mxu0 %v1537_v47  ;;  %v988_v33 = vld [vmem:[%s2483_s5 + $0x70] sm:$0xff]  ;;  %v952_v43 = vsub.s32 2, %v929_v38  ;;  %v930_v45 = vsub.s32 0, %v929_v38  ;;  %v940_v31 = vsub.s32 1, %v929_v38 }
 0x22a   :  { %1523 = vmatprep.subr.bf16.mxu1 %v1662_v16  ;;  %v962_v46 = vsub.s32 3, %v929_v38 }
 0x22d   :  { %1525 = vmatpush3.bf16.msra.mxu1 %v1524_v24 }
 0x22e   :  { %1526 = vmatprep.subr.bf16.mxu1 %v1662_v16 }
 0x231   :  { %1528 = vmatpush3.bf16.msra.mxu1 %v1527_v17 }
 0x232   :  { %1529 = vmatprep.subr.bf16.mxu1 %v1662_v16 }
 0x235   :  { %1531 = vmatpush3.bf16.msra.mxu1 %v1530_v14 }
 0x236   :  { %1532 = vmatprep.subr.bf16.mxu1 %v1662_v16 }
 0x239   :  { %1534 = vmatpush3.bf16.msra.mxu1 %v1533_v41  ;;  %v1005_v41 = vld [vmem:[%s2483_s5 + $0xf8] sm:$0xff] }
 0x23a   :  { %1567 = vmatprep.subr.bf16.mxu1 %v1662_v16  ;;  %v1563_v59 = vpack.c.bf16 %v1005_v41, %v1004_v40 }
 0x23c   :  { %1426 = vmatmul.mubr.f32.vlgmr.msra.gmra.mrb[2].mxu1 %v702_v30  ;;  %v989_v30 = vld [vmem:[%s2483_s5 + $0x78] sm:$0xff] }
 0x23d   :  { %1436 = vmatprep.mubr.msk.f32.mxu1 %vm1664_vm9, %v1655_v22  ;;  %v992_v22 = vld [vmem:[%s2483_s5 + $0x90] sm:$0xff]  ;;  %v1565_v42 = vpack.c.bf16 %v989_v30, %v988_v33 }
 0x23e   :  { %v1539_v37 = vpack.c.bf16 %v993_v13, %v992_v22 }
 0x240   :  { %1540 = vmatprep.subr.bf16.mxu0 %v1539_v37 }
 0x241   :  { %1542 = vmatpush3.bf16.msra.mxu0 %v1541_v29 }
 0x242   :  { %1544 = vmatprep.subr.bf16.mxu0 %v1543_v57 }
 0x245   :  { %1546 = vmatpush3.bf16.msra.mxu0 %v1545_v62 }
 0x246   :  { %1548 = vmatprep.subr.bf16.mxu0 %v1547_v52 }
 0x249   :  { %1550 = vmatpush3.bf16.msra.mxu0 %v1549_v2  ;;  %v1084_v2 = vld [vmem:[%s2485_s7] sm:$0xff] }
 0x24a   :  { %1552 = vmatprep.subr.bf16.mxu0 %v1551_v3  ;;  %v1085_v3 = vld [vmem:[%s2485_s7 + $0x8] sm:$0xff] }
 0x24b   :  { %v1568_v6 = vpack.c.bf16 %v1085_v3, %v1084_v2 }
 0x24d   :  { %1554 = vmatpush3.bf16.msra.mxu0 %v1553_v21  ;;  %1569 = vmatpush3.bf16.msra.mxu1 %v1568_v6 }
 0x24e   :  { %1556 = vmatprep.subr.bf16.mxu0 %v1555_v50  ;;  %1570 = vmatprep.subr.bf16.mxu1 %v1662_v16  ;;  %v1210_v50 = vld [vmem:[%s2484_s6] ss:$0 sm:$0xff]  ;;  %s1665_s6 = smov [#allocation2]  }
 0x24f   :  { %s1182_s7 = sshll.u32 %s1665_s6, 4  ;;  %s1183_s7 = int_to_ptr.vmem [resolvable:$true] %s1182_s7 }
 0x250   :  { %s1631_s20 = scalar_lea.vmem %s1183_s7, 32  ;;  %p1636_p1 = scmp.lt.s32.totalorder %s1183_s7, %s1183_s7 }
 0x251   :  { %1558 = vmatpush3.bf16.msra.mxu0 %v1557_v44  ;;  %1572 = vmatpush3.bf16.msra.mxu1 %v1571_v8  ;;  %v1211_v44 = vld [vmem:[%s2486_s8] ss:$0 sm:$0xff]  ;;  %p1632_p0 = scmp.ne.s32.totalorder %s1183_s7, %s1631_s20  ;;  %p1637_p2 = scmp.lt.s32.totalorder %s1631_s20, %s1631_s20 }
 0x252   :  { %1560 = vmatprep.subr.bf16.mxu0 %v1559_v63 }
 0x253   :  { %p1638_p3 = por %p1637_p2, %p1636_p1 }
 0x255   :  { %1562 = vmatpush3.bf16.msra.mxu0 %v1561_v20  ;;  %p1639_p4 = pnand %p1638_p3, %p1632_p0 }
 0x256   :  { %1564 = vmatprep.subr.bf16.mxu0 %v1563_v59 }
 0x259   :  { %1566 = vmatpush3.bf16.msra.mxu0 %v1565_v42 }
 0x2ef   :  { %v1266_v23 = vpop.f32.mrb[0].mxu1 }
 0x2f0   :  { %v1267_v9 = vpop.f32.mrb[1].mxu1 }
 0x2f1   :  { %v1268_v25 = vadd.f32 %v1267_v9, %v1266_v23 }
 0x2fb   :  { %v1301_v26 = vpop.f32.mrb[16].mxu0 }
 0x2fc   :  { %v1302_v27 = vpop.f32.mrb[17].mxu0 }
 0x2fd   :  { %v1303_v28 = vadd.f32 %v1302_v27, %v1301_v26 }
 0x2ff   :  { %v845_v24 = vadd.f32 %v1303_v28, %v1268_v25 }
 0x30f   :  { %v914_v35 = vpop.f32.mrb[2].mxu1 }
 0x310   :  { %v915_v17 = vadd.f32 %v914_v35, %v845_v24  ;;  %v1427_v60 = vpop.f32.mrb[3].mxu1 }
 0x312   :  { %v919_v36 = vcombine.high %v915_v17, %v915_v17  ;;  %v922_v14 = vadd.f32 %v921_v32, %v915_v17 }
 0x314   :  { %v923_v49 = vadd.f32 %v921_v32, %v919_v36  ;;  %1621 = vtanh.f32 %v922_v14 }
 0x316   :  { %1623 = vtanh.f32 %v923_v49 }
 0x31e   :  { %v1622_v22 = vpop.eup %1621 }
 0x31f   :  { %v953_v13 = vrot.slane %v1622_v22, %v952_v43  ;;  %v931_v47 = vrot.slane %v1622_v22, %v930_v45  ;;  %v941_v48 = vrot.slane %v1622_v22, %v940_v31  ;;  %v963_v51 = vrot.slane %v1622_v22, %v962_v46 }
 0x320   :  { %v1624_v37 = vpop.eup %1623 }
 0x321   :  { %v945_v55 = vrot.slane %v1624_v37, %v940_v31  ;;  %v967_v56 = vrot.slane %v1624_v37, %v962_v46  ;;  %v957_v29 = vrot.slane %v1624_v37, %v952_v43  ;;  %v935_v57 = vrot.slane %v1624_v37, %v930_v45 }
 0x323   :  { %v946_v54 = vsel %vm437_vm4, %v945_v55, %v941_v48  ;;  %v968_v58 = vsel %vm437_vm4, %v967_v56, %v963_v51  ;;  %v958_v39 = vsel %vm437_vm4, %v957_v29, %v953_v13  ;;  %v936_v61 = vsel %vm437_vm4, %v935_v57, %v931_v47 }
 0x324   :  { %v1584_v62 = vpack.i.bf16 %v946_v54, %v968_v58 }
 0x326   :  { %1585 = vrot.lane.b32.xlu0 %v1584_v62, %s1659_s21 }
 0x398   :  { %v1586_v52 = vpop.permute.xlu0 %1585 }
 0x399   :  { %v1588_v4 = vunpack.i.h.bf16 %v1586_v52  ;;  %v1587_v0 = vunpack.i.l.bf16 %v1586_v52 }
 0x39b   :  { %v973_v1 = vsel %vm419_vm2, %v958_v39, %v1587_v0  ;;  %v972_v53 = vsel %vm419_vm2, %v936_v61, %v1588_v4 }
 0x39c   :  { %1077 = vmatprep.mubr.f32.mxu0 %v973_v1 }
 0x39d   :  { %1078 = vmatmul.mubr.f32.vlgmr.msra.gmra.mrb[18].mxu0 %v972_v53 }
 0x470   :  { %v1353_v21 = vpop.f32.mrb[18].mxu0 }
 0x471   :  { %v1354_v11 = vpop.f32.mrb[19].mxu0 }
 0x472   :  { %v1355_v10 = vadd.f32 %v1354_v11, %v1353_v21 }
 0x474   :  { %v1080_v12 = vadd.f32 %v1355_v10, %v1210_v50 }
 0x476   :  { %1625 = vtanh.f32 %v1080_v12 }
 0x480   :  { %v1626_v15 = vpop.eup %1625 }
 0x481   :  { %1437 = vmatmul.mubr.msk.f32.vlgmr.msra.gmra.mrb[4].mxu1 %vm53_vm0, %v1626_v15 }
 0x554   :  { %v1164_v63 = vpop.f32.mrb[4].mxu1 }
 0x555   :  { %v1165_v18 = vadd.f32 %v1211_v44, %v1164_v63  ;;  %v1438_v16 = vpop.f32.mrb[5].mxu1 }
 0x557   :  { %v1213_v19 = vmul.f32 -1.442695, %v1165_v18 }
 0x559   :  { %1627 = vpow2.f32 %v1213_v19 }
 0x563   :  { %v1628_v20 = vpop.eup %1627 }
 0x564   :  { %v1171_v23 = vadd.f32 1.0, %v1628_v20 }
 0x566   :  { %1629 = vrcp.f32 %v1171_v23 }
 0x570   :  { %v1630_v9 = vpop.eup %1629 }
 0x571   :  { %1175 = vst.msk [vmem:[#allocation2] sm:$0x3] %vm1174_vm11, %v1630_v9 }
 0x572   :  { %1642 = shalt.err (!%p1639_p4)
}
 0x573   :  { %s1643_s1 = scalar_lea.hbm %s2487_s9, 32 }
 0x574   :  { %p1644_p5 = scmp.ne.s32.totalorder %s2487_s9, %s1643_s1  ;;  %p1647_p6 = scmp.lt.u32.totalorder %s1643_s1, %s2487_s9 }
 0x576   :  { %p1649_p7 = pnand %p1647_p6, %p1644_p5 }
 0x578   :  { %1652 = shalt.err (!%p1649_p7)
}
 0x579   :  { %1185 = dma.vmem_to_hbm [thread:$0]  %s1183_s7, 32, %s2487_s9, [#allocation3]  }
 0x57a   :  { %1653 = dma.done.wait [#allocation3], 32  }
 0x57b   :  { %1654 = vsyncadd [#allocation3], 4294967264 }
 0x57c   :  { %1189 = vsyncpa [#allocation3], 1 }

</bundles_post_ra>
